<compile_context>
chip_gen: v7x
topology: tpu7x:2x2x1
jax: 0.10.0
libtpu: 0.0.40
codegen_flags: <defaults>
</compile_context>

<pallas_src>
import jax
import jax.numpy as jnp
from jax.experimental import pallas as pl
from jax.experimental.pallas import tpu as pltpu

# TODO(synk): gym.make('FrozenLake-v1') has no Pallas equivalent; its sizes
# are hard-coded instead.
N_STATES = 16          # FrozenLake-v1 observation space
N_HIDDEN = 10
N_ACTIONS = 4          # FrozenLake-v1 action space

LANES = 128            # lane width of a vreg / packed row
GROUP = 16             # lanes per packed sample (== N_STATES)
SAMPLES_PER_ROW = LANES // GROUP   # 8 samples per 128-lane row
P_ROWS = LANES + 8                 # 136: rows 0..127 = W_bd, row 128 = bias
BIAS_ROW = LANES

MAX_TILE_ROWS = 1024   # 8192 samples per grid step (~0.5 MiB x-tile, VMEM-cheap)
MIN_SPLIT_ROWS = 64    # split into >=2 tiles above 512 samples (v7x has 2 TCs)

assert N_STATES == GROUP and N_HIDDEN <= GROUP and N_ACTIONS <= GROUP
assert LANES % GROUP == 0 and P_ROWS % 8 == 0


def _round_up(x, m):
    return ((x + m - 1) // m) * m


def net_kernel(x_ref, p_ref, o_ref):
    # Packed parameter layout (all unused entries are exactly zero):
    #   p[0, :128, :] = block-diag W1 (8 copies of (16,10) at 16-lane offsets)
    #   p[0, 128, :]  = lane-tiled b1
    #   p[1, :128, :] = block-diag W2 (8 copies of (10,4))
    #   p[1, 128, :]  = lane-tiled b2
    w1 = p_ref[0, :LANES, :]                       # (128, 128)
    b1 = p_ref[0, BIAS_ROW:BIAS_ROW + 1, :]        # (1, 128)
    w2 = p_ref[1, :LANES, :]                       # (128, 128)
    b2 = p_ref[1, BIAS_ROW:BIAS_ROW + 1, :]        # (1, 128)

    # fc1 + ReLU, 8 independent samples per row (block-diagonal weights keep
    # the 16-lane groups from mixing; padded lanes stay exactly zero).
    h = jnp.dot(x_ref[...], w1, preferred_element_type=jnp.float32) + b1
    h = jnp.maximum(h, 0.0)
    # out layer: sample j's Q-values land in lanes 16j..16j+3.
    y = jnp.dot(h, w2, preferred_element_type=jnp.float32) + b2
    o_ref[...] = y.astype(o_ref.dtype)


def pack_params(w1, b1, w2, b2):
    """Pack (16,10) w1, (10,) b1, (10,4) w2, (4,) b2 into one (2,136,128) slab.

    Weights are stored (in, out); transpose PyTorch nn.Linear weights before
    calling.  Every entry not explicitly set below must remain exactly zero —
    that invariant is what keeps padded lanes/groups from leaking between
    samples.
    """
    w1 = jnp.asarray(w1, jnp.float32)
    b1 = jnp.asarray(b1, jnp.float32).reshape(-1)
    w2 = jnp.asarray(w2, jnp.float32)
    b2 = jnp.asarray(b2, jnp.float32).reshape(-1)
    assert w1.shape == (N_STATES, N_HIDDEN)
    assert b1.shape == (N_HIDDEN,)
    assert w2.shape == (N_HIDDEN, N_ACTIONS)
    assert b2.shape == (N_ACTIONS,)

    w1_bd = jnp.zeros((LANES, LANES), jnp.float32)
    w2_bd = jnp.zeros((LANES, LANES), jnp.float32)
    b1_t = jnp.zeros((LANES,), jnp.float32)
    b2_t = jnp.zeros((LANES,), jnp.float32)
    for j in range(SAMPLES_PER_ROW):
        r = j * GROUP
        w1_bd = w1_bd.at[r:r + N_STATES, r:r + N_HIDDEN].set(w1)
        w2_bd = w2_bd.at[r:r + N_HIDDEN, r:r + N_ACTIONS].set(w2)
        b1_t = b1_t.at[r:r + N_HIDDEN].set(b1)
        b2_t = b2_t.at[r:r + N_ACTIONS].set(b2)

    p = jnp.zeros((2, P_ROWS, LANES), jnp.float32)
    p = p.at[0, :LANES, :].set(w1_bd).at[0, BIAS_ROW, :].set(b1_t)
    p = p.at[1, :LANES, :].set(w2_bd).at[1, BIAS_ROW, :].set(b2_t)
    return p


@jax.jit
def _net_forward_bucketed(x, packed_params):
    """x: (Bb, 16) with Bb a multiple of 64 -> (Bb, 4) Q-values."""
    bb = x.shape[0]
    rows = bb // SAMPLES_PER_ROW                      # multiple of 8
    # Balanced, 8-aligned row tiling; >=2 tiles once there's enough work so
    # the "parallel" axis shards across both TensorCores on v7x.
    grid_b = max(pl.cdiv(rows, MAX_TILE_ROWS),
                 2 if rows >= MIN_SPLIT_ROWS else 1)
    tr = _round_up(pl.cdiv(rows, grid_b), 8)
    rows_tot = grid_b * tr

    xp = x.astype(jnp.float32).reshape(rows, LANES)   # free contiguous reshape
    if rows_tot != rows:
        xp = jnp.zeros((rows_tot, LANES), jnp.float32).at[:rows, :].set(xp)

    out = pl.pallas_call(
        net_kernel,
        out_shape=jax.ShapeDtypeStruct((rows_tot, LANES), jnp.float32),
        grid=(grid_b,),
        in_specs=[
            pl.BlockSpec((tr, LANES), lambda i: (i, 0)),
            pl.BlockSpec((2, P_ROWS, LANES), lambda i: (0, 0, 0)),
        ],
        out_specs=pl.BlockSpec((tr, LANES), lambda i: (i, 0)),
        compiler_params=pltpu.CompilerParams(
            dimension_semantics=("parallel",)),
    )(xp, packed_params)

    # Unpack the 8-sample groups: lanes 16j..16j+3 of row r are sample 8r+j.
    q = out.reshape(rows_tot * SAMPLES_PER_ROW, GROUP)[:, :N_ACTIONS]
    return q[:bb]


def net_forward(x, packed_params):
    """actions_value = relu(x @ W1 + b1) @ W2 + b2 ; x: (B, 16) -> (B, 4).

    B is bucketed up to the next multiple of 64 before the jitted call so a
    DQN loop with a few distinct env/replay batch sizes only triggers a few
    Mosaic compiles (quantize further at the call site if B varies wildly).
    """
    b = x.shape[0]
    bb = max(64, _round_up(b, 64))
    if bb != b:
        x = jnp.zeros((bb, N_STATES), x.dtype).at[:b, :].set(x)
    return _net_forward_bucketed(x, packed_params)[:b]


def init_params(key):
    """Deterministic init mirroring the PyTorch module's __init__.

    fc1: default PyTorch Linear init (uniform +/- 1/sqrt(fan_in)).
    out: weight ~ Normal(0, 0.1) (explicit in module), bias default uniform.
    Weights are stored (in, out) so the kernel computes x @ W directly.
    """
    k1, k2, k3, k4 = jax.random.split(key, 4)
    bound1 = 1.0 / jnp.sqrt(N_STATES)
    w1 = jax.random.uniform(k1, (N_STATES, N_HIDDEN), jnp.float32,
                            minval=-bound1, maxval=bound1)
    b1 = jax.random.uniform(k2, (N_HIDDEN,), jnp.float32,
                            minval=-bound1, maxval=bound1)
    w2 = 0.1 * jax.random.normal(k3, (N_HIDDEN, N_ACTIONS), jnp.float32)
    bound2 = 1.0 / jnp.sqrt(N_HIDDEN)
    b2 = jax.random.uniform(k4, (N_ACTIONS,), jnp.float32,
                            minval=-bound2, maxval=bound2)
    return w1, b1, w2, b2


if __name__ == "__main__":
    key = jax.random.PRNGKey(0)
    k_params, k_x1, k_x2, k_x3 = jax.random.split(key, 4)
    w1, b1, w2, b2 = init_params(k_params)
    packed = pack_params(w1, b1, w2, b2)

    def ref_fn(xb):
        return jnp.maximum(xb @ w1 + b1[None, :], 0.0) @ w2 + b2[None, :]

    # Small online-action batch (single grid step, bucket 64).
    B = 8
    x = jax.random.normal(k_x1, (B, N_STATES), jnp.float32)
    out = jax.block_until_ready(net_forward(x, packed))
    assert out.shape == (B, N_ACTIONS)
    assert jnp.allclose(out, ref_fn(x), atol=1e-5, rtol=1e-5)

    # Odd batch (exercises bucketing/padding; reuses the bucket-64 compile).
    B1 = 5
    x1 = jax.random.normal(k_x3, (B1, N_STATES), jnp.float32)
    out1 = jax.block_until_ready(net_forward(x1, packed))
    assert out1.shape == (B1, N_ACTIONS)
    assert jnp.allclose(out1, ref_fn(x1), atol=1e-5, rtol=1e-5)

    # Replay-minibatch-sized batch: buckets 600 -> 640, packed rows = 80,
    # split into 2 balanced 40-row tiles (both TensorCores on v7x).
    B2 = 600
    x2 = jax.random.normal(k_x2, (B2, N_STATES), jnp.float32)
    out2 = jax.block_until_ready(net_forward(x2, packed))
    assert out2.shape == (B2, N_ACTIONS)
    assert jnp.allclose(out2, ref_fn(x2), atol=1e-5, rtol=1e-5)

    print("KERNEL_OK")
</pallas_src>

<mosaic_0001>
module attributes {stable_mosaic.version = 11 : i64} {
  func.func @net_kernel(%arg0: i32, %arg1: memref<8x128xf32, #tpu.memory_space<vmem>>, %arg2: memref<2x136x128xf32, #tpu.memory_space<vmem>>, %arg3: memref<8x128xf32, #tpu.memory_space<vmem>>) attributes {dimension_semantics = [#tpu.dimension_semantics<parallel>], iteration_bounds = array<i64: 1>, scalar_prefetch = 0 : i64, scratch_operands = 0 : i64, tpu.core_type = #tpu.core_type<tc>, window_params = [{transform_indices = @transform_0, window_bounds = array<i64: 8, 128>}, {pipeline_mode = #tpu.pipeline_mode<synchronous>, transform_indices = @transform_1, window_bounds = array<i64: 2, 136, 128>}, {transform_indices = @transform_2, window_bounds = array<i64: 8, 128>}]} {
    %c0 = arith.constant 0 : index
    %c0_0 = arith.constant 0 : index
    %c0_1 = arith.constant 0 : index
    %0 = vector.load %arg2[%c0, %c0_0, %c0_1] : memref<2x136x128xf32, #tpu.memory_space<vmem>>, vector<1x128x128xf32>
    %1 = vector.shape_cast %0 : vector<1x128x128xf32> to vector<128x128xf32>
    %c0_2 = arith.constant 0 : index
    %c128 = arith.constant 128 : index
    %c0_3 = arith.constant 0 : index
    %2 = vector.load %arg2[%c0_2, %c128, %c0_3] : memref<2x136x128xf32, #tpu.memory_space<vmem>>, vector<1x1x128xf32>
    %3 = vector.shape_cast %2 : vector<1x1x128xf32> to vector<1x128xf32>
    %c1 = arith.constant 1 : index
    %c0_4 = arith.constant 0 : index
    %c0_5 = arith.constant 0 : index
    %4 = vector.load %arg2[%c1, %c0_4, %c0_5] : memref<2x136x128xf32, #tpu.memory_space<vmem>>, vector<1x128x128xf32>
    %5 = vector.shape_cast %4 : vector<1x128x128xf32> to vector<128x128xf32>
    %c1_6 = arith.constant 1 : index
    %c128_7 = arith.constant 128 : index
    %c0_8 = arith.constant 0 : index
    %6 = vector.load %arg2[%c1_6, %c128_7, %c0_8] : memref<2x136x128xf32, #tpu.memory_space<vmem>>, vector<1x1x128xf32>
    %7 = vector.shape_cast %6 : vector<1x1x128xf32> to vector<1x128xf32>
    %c0_9 = arith.constant 0 : index
    %c0_10 = arith.constant 0 : index
    %8 = vector.load %arg1[%c0_9, %c0_10] : memref<8x128xf32, #tpu.memory_space<vmem>>, vector<8x128xf32>
    %cst = arith.constant dense<0.000000e+00> : vector<8x128xf32>
    %9 = tpu.matmul %8, %1, %cst {dimension_numbers = #tpu.dot_dimension_numbers<[1], [0], [0], [1], [0, 0, 1, 1], [], []>} : vector<8x128xf32>, vector<128x128xf32>, vector<8x128xf32> -> vector<8x128xf32>
    %10 = vector.broadcast %3 : vector<1x128xf32> to vector<8x128xf32>
    %11 = arith.addf %9, %10 : vector<8x128xf32>
    %cst_11 = arith.constant 0.000000e+00 : f32
    %12 = vector.broadcast %cst_11 : f32 to vector<8x128xf32>
    %13 = arith.maximumf %11, %12 : vector<8x128xf32>
    %cst_12 = arith.constant dense<0.000000e+00> : vector<8x128xf32>
    %14 = tpu.matmul %13, %5, %cst_12 {dimension_numbers = #tpu.dot_dimension_numbers<[1], [0], [0], [1], [0, 0, 1, 1], [], []>} : vector<8x128xf32>, vector<128x128xf32>, vector<8x128xf32> -> vector<8x128xf32>
    %15 = vector.broadcast %7 : vector<1x128xf32> to vector<8x128xf32>
    %16 = arith.addf %14, %15 : vector<8x128xf32>
    %c0_13 = arith.constant 0 : index
    %c0_14 = arith.constant 0 : index
    %17 = vector.load %arg3[%c0_13, %c0_14] : memref<8x128xf32, #tpu.memory_space<vmem>>, vector<8x128xf32>
    tpu.vector_store %arg3[%c0_13, %c0_14], %16 {strides = array<i32>} : memref<8x128xf32, #tpu.memory_space<vmem>>, vector<8x128xf32>,
    return
  }
  func.func @transform_0(%arg0: i32) -> (i32, i32) {
    %c0_i32 = arith.constant 0 : i32
    %c0_i32_0 = arith.constant 0 : i32
    return %arg0, %c0_i32 : i32, i32
  }
  func.func @transform_1(%arg0: i32) -> (i32, i32, i32) {
    %c0_i32 = arith.constant 0 : i32
    %c0_i32_0 = arith.constant 0 : i32
    %c0_i32_1 = arith.constant 0 : i32
    %c0_i32_2 = arith.constant 0 : i32
    return %c0_i32, %c0_i32_0, %c0_i32_1 : i32, i32, i32
  }
  func.func @transform_2(%arg0: i32) -> (i32, i32) {
    %c0_i32 = arith.constant 0 : i32
    %c0_i32_0 = arith.constant 0 : i32
    return %arg0, %c0_i32 : i32, i32
  }
}

</mosaic_0001>

<bundles_post_ra>
// kernel: _net_forward_bucketed.1
= control target key start
LH: loop header
LB: loop body
LE: loop exit
PB: predicated region body
PF: predicated region fallthrough
CT: control target
= control target key end

     0   :  { %7 = vsyncpa [#allocation3], 0  ;;  %s400_s9 = smov [#allocation2]   ;;  %s455_s0 = inlined_call_operand.vmem [shape: f32[8,128], index: 0, kind: input, shape index: {}]   ;;  %s456_s1 = inlined_call_operand.hbm [shape: f32[2,136,128], index: 1, kind: input, shape index: {}]   ;;  %s457_s2 = inlined_call_operand.vmem [shape: f32[8,128], index: 2, kind: output, shape index: {}]  }
   0x1   :  { %s15_s10 = sshll.u32 %s400_s9, 4  ;;  %s376_s13 = scalar_lea.hbm %s456_s1, 4352  ;;  %s16_s10 = int_to_ptr.vmem [resolvable:$true] %s15_s10 }
   0x2   :  { %p377_p0 = scmp.ne.s32.totalorder %s456_s1, %s376_s13  ;;  %p380_p1 = scmp.lt.u32.totalorder %s376_s13, %s456_s1 }
   0x4   :  { %p382_p2 = pnand %p380_p1, %p377_p0 }
   0x6   :  { %385 = shalt.err (!%p382_p2)
}
   0x7   :  { %s386_s18 = scalar_lea.vmem %s16_s10, 4352  ;;  %p391_p4 = scmp.lt.s32.totalorder %s16_s10, %s16_s10 }
   0x8   :  { %p387_p3 = scmp.ne.s32.totalorder %s16_s10, %s386_s18  ;;  %p392_p5 = scmp.lt.s32.totalorder %s386_s18, %s386_s18 }
   0xa   :  { %p393_p6 = por %p392_p5, %p391_p4 }
   0xc   :  { %p394_p7 = pnand %p393_p6, %p387_p3 }
   0xe   :  { %397 = shalt.err (!%p394_p7)
}
   0xf   :  { %s401_s19 = smov 128   ;;  %s402_s20 = smov 8  }
  0x10   :  { %21 = dma.hbm_to_vmem [thread:$0]  %s456_s1, 4352, %s16_s10, [#allocation3], %s401_s19, %s401_s19, %s402_s20  }
  0x11   :  { %398 = dma.done.wait [#allocation3], 4352  }
  0x12   :  { %399 = vsyncadd [#allocation3], 4294962944  ;;  %v403_v0 = vmov 0.0|0.0   ;;  %vm404_vm0 = vmmov 0   ;;  %v405_v1 = vmov 0.0   ;;  %v25_v2 = vld [vmem:[#allocation2] sm:$0xff] }
  0x13   :  { %322 = vmatprep.subr.bf16.mxu0 %v403_v0  ;;  %284 = vmatprep.mubr.msk.f32.mxu0 %vm404_vm0, %v405_v1  ;;  %v26_v3 = vld [vmem:[#allocation2 + $0x8] sm:$0xff]  ;;  %v27_v4 = vld [vmem:[#allocation2 + $0x10] sm:$0xff]  ;;  %v28_v6 = vld [vmem:[#allocation2 + $0x18] sm:$0xff] }
  0x14   :  { %346 = vmatprep.subr.bf16.mxu1 %v403_v0  ;;  %319 = vmatprep.mubr.msk.f32.mxu1 %vm404_vm0, %v405_v1  ;;  %v323_v5 = vpack.c.bf16 %v26_v3, %v25_v2  ;;  %v326_v7 = vpack.c.bf16 %v28_v6, %v27_v4  ;;  %v29_v8 = vld [vmem:[#allocation2 + $0x20] sm:$0xff]  ;;  %v30_v9 = vld [vmem:[#allocation2 + $0x28] sm:$0xff]  ;;  %v44_v11 = vld [vmem:[#allocation2 + $0x90] sm:$0xff] }
  0x15   :  { %v43_v10 = vld [vmem:[#allocation2 + $0x88] sm:$0xff]  ;;  %v45_v12 = vld [vmem:[#allocation2 + $0x98] sm:$0xff]  ;;  %v46_v13 = vld [vmem:[#allocation2 + $0xa0] sm:$0xff]  ;;  %v329_v14 = vpack.c.bf16 %v30_v9, %v29_v8 }
  0x16   :  { %324 = vmatpush3.bf16.msra.mxu0 %v323_v5  ;;  %v347_v15 = vpack.c.bf16 %v44_v11, %v43_v10  ;;  %v31_v16 = vld [vmem:[#allocation2 + $0x30] sm:$0xff]  ;;  %v32_v17 = vld [vmem:[#allocation2 + $0x38] sm:$0xff]  ;;  %v350_v18 = vpack.c.bf16 %v46_v13, %v45_v12  ;;  %v47_v19 = vld [vmem:[#allocation2 + $0xa8] sm:$0xff] }
  0x17   :  { %325 = vmatprep.subr.bf16.mxu0 %v403_v0  ;;  %v48_v20 = vld [vmem:[#allocation2 + $0xb0] sm:$0xff]  ;;  %v332_v21 = vpack.c.bf16 %v32_v17, %v31_v16  ;;  %v33_v22 = vld [vmem:[#allocation2 + $0x40] sm:$0xff]  ;;  %v34_v23 = vld [vmem:[#allocation2 + $0x48] sm:$0xff] }
  0x18   :  { %348 = vmatpush3.bf16.msra.mxu1 %v347_v15  ;;  %v353_v24 = vpack.c.bf16 %v48_v20, %v47_v19  ;;  %v49_v25 = vld [vmem:[#allocation2 + $0xb8] sm:$0xff]  ;;  %v50_v26 = vld [vmem:[#allocation2 + $0xc0] sm:$0xff]  ;;  %v335_v27 = vpack.c.bf16 %v34_v23, %v33_v22  ;;  %v35_v28 = vld [vmem:[#allocation2 + $0x50] sm:$0xff] }
  0x19   :  { %349 = vmatprep.subr.bf16.mxu1 %v403_v0  ;;  %v36_v29 = vld [vmem:[#allocation2 + $0x58] sm:$0xff]  ;;  %v356_v30 = vpack.c.bf16 %v50_v26, %v49_v25  ;;  %v51_v31 = vld [vmem:[#allocation2 + $0xc8] sm:$0xff]  ;;  %v52_v32 = vld [vmem:[#allocation2 + $0xd0] sm:$0xff] }
  0x1a   :  { %327 = vmatpush3.bf16.msra.mxu0 %v326_v7  ;;  %v338_v33 = vpack.c.bf16 %v36_v29, %v35_v28  ;;  %v37_v34 = vld [vmem:[#allocation2 + $0x60] sm:$0xff]  ;;  %v38_v35 = vld [vmem:[#allocation2 + $0x68] sm:$0xff]  ;;  %v359_v36 = vpack.c.bf16 %v52_v32, %v51_v31  ;;  %v53_v37 = vld [vmem:[#allocation2 + $0xd8] sm:$0xff] }
  0x1b   :  { %328 = vmatprep.subr.bf16.mxu0 %v403_v0  ;;  %v54_v38 = vld [vmem:[#allocation2 + $0xe0] sm:$0xff]  ;;  %v341_v39 = vpack.c.bf16 %v38_v35, %v37_v34  ;;  %v39_v40 = vld [vmem:[#allocation2 + $0x70] sm:$0xff]  ;;  %v40_v41 = vld [vmem:[#allocation2 + $0x78] sm:$0xff] }
  0x1c   :  { %351 = vmatpush3.bf16.msra.mxu1 %v350_v18  ;;  %v362_v42 = vpack.c.bf16 %v54_v38, %v53_v37  ;;  %v55_v43 = vld [vmem:[#allocation2 + $0xe8] sm:$0xff]  ;;  %v56_v44 = vld [vmem:[#allocation2 + $0xf0] sm:$0xff]  ;;  %v344_v45 = vpack.c.bf16 %v40_v41, %v39_v40  ;;  %v60_v47 = vld [vmem:[%s455_s0] sm:$0xff] }
  0x1d   :  { %352 = vmatprep.subr.bf16.mxu1 %v403_v0  ;;  %v365_v46 = vpack.c.bf16 %v56_v44, %v55_v43  ;;  %v57_v48 = vld [vmem:[#allocation2 + $0xf8] sm:$0xff]  ;;  %v58_v49 = vld [vmem:[#allocation2 + $0x100] sm:$0xff]  ;;  %v217_v56 = vld [vmem:[#allocation2 + $0x108] ss:$0 sm:$0xff] }
  0x1e   :  { %330 = vmatpush3.bf16.msra.mxu0 %v329_v14  ;;  %v368_v50 = vpack.c.bf16 %v58_v49, %v57_v48  ;;  %v216_v51 = vld [vmem:[#allocation2 + $0x80] ss:$0 sm:$0xff] }
  0x1f   :  { %331 = vmatprep.subr.bf16.mxu0 %v403_v0 }
  0x20   :  { %354 = vmatpush3.bf16.msra.mxu1 %v353_v24 }
  0x21   :  { %355 = vmatprep.subr.bf16.mxu1 %v403_v0 }
  0x22   :  { %333 = vmatpush3.bf16.msra.mxu0 %v332_v21 }
  0x23   :  { %334 = vmatprep.subr.bf16.mxu0 %v403_v0 }
  0x24   :  { %357 = vmatpush3.bf16.msra.mxu1 %v356_v30 }
  0x25   :  { %358 = vmatprep.subr.bf16.mxu1 %v403_v0 }
  0x26   :  { %336 = vmatpush3.bf16.msra.mxu0 %v335_v27 }
  0x27   :  { %337 = vmatprep.subr.bf16.mxu0 %v403_v0 }
  0x28   :  { %360 = vmatpush3.bf16.msra.mxu1 %v359_v36 }
  0x29   :  { %361 = vmatprep.subr.bf16.mxu1 %v403_v0 }
  0x2a   :  { %339 = vmatpush3.bf16.msra.mxu0 %v338_v33 }
  0x2b   :  { %340 = vmatprep.subr.bf16.mxu0 %v403_v0 }
  0x2c   :  { %363 = vmatpush3.bf16.msra.mxu1 %v362_v42 }
  0x2d   :  { %364 = vmatprep.subr.bf16.mxu1 %v403_v0 }
  0x2e   :  { %342 = vmatpush3.bf16.msra.mxu0 %v341_v39 }
  0x2f   :  { %343 = vmatprep.subr.bf16.mxu0 %v403_v0 }
  0x30   :  { %366 = vmatpush3.bf16.msra.mxu1 %v365_v46 }
  0x31   :  { %367 = vmatprep.subr.bf16.mxu1 %v403_v0 }
  0x32   :  { %345 = vmatpush3.bf16.msra.mxu0 %v344_v45 }
  0x34   :  { %369 = vmatpush3.bf16.msra.mxu1 %v368_v50 }
  0x35   :  { %285 = vmatmul.mubr.f32.vlgmr.msra.gmra.mrb[0].mxu0 %v60_v47 }
 0x108   :  { %v131_v52 = vpop.f32.mrb[0].mxu0 }
 0x109   :  { %v132_v53 = vadd.f32 %v216_v51, %v131_v52  ;;  %v286_v54 = vpop.f32.mrb[1].mxu0 }
 0x10b   :  { %v135_v55 = vmax.f32 %v132_v53, 0.0 }
 0x10d   :  { %320 = vmatmul.mubr.f32.vlgmr.msra.gmra.mrb[0].mxu1 %v135_v55 }
 0x1e0   :  { %v206_v57 = vpop.f32.mrb[0].mxu1 }
 0x1e1   :  { %v207_v58 = vadd.f32 %v217_v56, %v206_v57  ;;  %v321_v59 = vpop.f32.mrb[1].mxu1 }
 0x1e3   :  { %210 = vst [vmem:[%s457_s2] sm:$0xff] %v207_v58 }
 0x1e4   :  { %215 = vsyncpa [#allocation3], 1 }

</bundles_post_ra>
